<compile_context>
chip_gen: v6e
topology: v6e:2x2x1
jax: 0.10.0
libtpu: 0.0.40
codegen_flags: <defaults>
</compile_context>

<pallas_src>
import numpy as np

import jax
import jax.numpy as jnp
from jax.experimental import pallas as pl
from jax.experimental.pallas import tpu as pltpu


_LANE = 128
_SUBLANE = 8

# VMEM budgeting: pick block sizes so one pallas_call's working set stays under
# this budget; raise vmem_limit_bytes only when we exceed the smallest default
# scoped limit (v5e: 16 MiB).  Cap well below v7x's 64 MiB physical VMEM.
_VMEM_BLOCK_BUDGET = 24 * 1024 * 1024
_VMEM_DEFAULT_SAFE = 14 * 1024 * 1024
_VMEM_LIMIT_CAP = 48 * 1024 * 1024

# Use the fused Kronecker resize only while the combined matrix stays small;
# production image sizes (128/256 px) fall back to the separable path.
_KRON_BYTES_LIMIT = 4 * 1024 * 1024


def _round_up(x, m):
    return ((x + m - 1) // m) * m


def _mosaic_params(vmem_estimate_bytes):
    kwargs = dict(dimension_semantics=("parallel",))
    if vmem_estimate_bytes > _VMEM_DEFAULT_SAFE:
        kwargs["vmem_limit_bytes"] = int(
            min(_round_up(vmem_estimate_bytes * 5 // 4, 1 << 20), _VMEM_LIMIT_CAP))
    return pltpu.CompilerParams(**kwargs)


def _const_spec(shape, index_map, multi_step):
    """Grid-invariant operand: single-buffer it when a real grid remains."""
    if multi_step:
        return pl.BlockSpec(shape, index_map, pipeline_mode=pl.Buffered(1))
    return pl.BlockSpec(shape, index_map)


# ----------------------------------------------------------------------------
# Pallas kernel 1: dense linear layer (instruction encoder), lane-dense output
# ----------------------------------------------------------------------------
def _linear_kernel(x_ref, w_ref, b_ref, o_ref):
    # x: (TM, K)  w: (K, Np)  b: (1, Np)  ->  o: (TM, Np)   (Np % 128 == 0)
    acc = jnp.dot(x_ref[...], w_ref[...], preferred_element_type=jnp.float32)
    o_ref[...] = (acc + b_ref[...]).astype(o_ref.dtype)


def linear_pallas_padded(x2d, w_pad, b_pad):
    """x2d: (M, K), w_pad: (K, Np), b_pad: (1, Np), Np % 128 == 0 -> (M, Np)."""
    M, K = x2d.shape
    K2, Np = w_pad.shape
    assert K == K2 and Np % _LANE == 0

    const_bytes = 4 * (K * Np + Np)
    # Large M tiles amortize the ~0.35us/step pipeline overhead; the >= 2*cand
    # guard keeps >=2 blocks on the parallel axis (v7x has 2 TensorCores).
    tm = None
    for cand in (2048, 1024, 512):
        if M >= 2 * cand and 2 * 4 * cand * (K + Np) + const_bytes <= _VMEM_BLOCK_BUDGET:
            tm = cand
            break
    if tm is None:
        tm = _round_up(M, _SUBLANE)            # single sublane-aligned block

    Mp = _round_up(M, tm)                      # cdiv grid via padding
    xp = jnp.pad(x2d, ((0, Mp - M), (0, 0))) if Mp != M else x2d
    grid_m = Mp // tm
    vmem_est = 2 * 4 * tm * (K + Np) + const_bytes

    # NOTE: on v6e/v7x, casting x/w to bf16 (keeping f32 accumulation) would use
    # the full-rate MXU; only worthwhile at large B*L.
    out = pl.pallas_call(
        _linear_kernel,
        out_shape=jax.ShapeDtypeStruct((Mp, Np), x2d.dtype),
        grid=(grid_m,),
        in_specs=[
            pl.BlockSpec((tm, K), lambda i: (i, 0)),
            _const_spec((K, Np), lambda i: (0, 0), grid_m > 1),
            _const_spec((1, Np), lambda i: (0, 0), grid_m > 1),
        ],
        out_specs=pl.BlockSpec((tm, Np), lambda i: (i, 0)),
        compiler_params=_mosaic_params(vmem_est),
    )(xp, w_pad, b_pad)
    return out[:M] if Mp != M else out


# ----------------------------------------------------------------------------
# Host-side construction of exact bilinear (align_corners=False) matrices
# ----------------------------------------------------------------------------
def _interp_matrix_np(out_size, in_size):
    """Row-stochastic matrix reproducing torch F.interpolate(bilinear,
    align_corners=False) along one axis. Built once on the host at init."""
    if out_size == in_size:
        return np.eye(out_size, dtype=np.float32)
    scale = in_size / out_size
    A = np.zeros((out_size, in_size), np.float32)
    for o in range(out_size):
        src = max((o + 0.5) * scale - 0.5, 0.0)   # torch clamps negatives to 0
        lo = min(int(np.floor(src)), in_size - 1)
        hi = min(lo + 1, in_size - 1)
        w_hi = src - lo
        A[o, lo] += 1.0 - w_hi
        A[o, hi] += w_hi
    return A


# ----------------------------------------------------------------------------
# Pallas kernel 2a: fused pyramid resize as ONE lane-dense matmul (small H,W)
#   (P, Hi*Wi) @ (Hi*Wi, Np)  with Np = sum_k Ho_k*Wo_k padded to 128
# ----------------------------------------------------------------------------
def _pyramid_kron_kernel(x_ref, m_ref, o_ref):
    o_ref[...] = jnp.dot(x_ref[...], m_ref[...],
                         preferred_element_type=jnp.float32).astype(o_ref.dtype)


def pyramid_resize_kron(planes_flat, kron_mat, out_dtype):
    """planes_flat: (P, Hi*Wi) -> packed (P, Np) slab (all unique levels)."""
    P, F = planes_flat.shape
    F2, Np = kron_mat.shape
    assert F == F2 and Np % _LANE == 0

    const_bytes = 4 * F * Np
    per_plane = 2 * 4 * (F + Np)                       # double-buffered in+out row
    pb_max = max((_VMEM_BLOCK_BUDGET - const_bytes) // per_plane, _SUBLANE)
    if P <= pb_max:
        pb = P                                         # single block (toy sizes)
    else:
        pb = max((pb_max // _SUBLANE) * _SUBLANE, _SUBLANE)
    Pp = _round_up(P, pb)
    xp = jnp.pad(planes_flat, ((0, Pp - P), (0, 0))) if Pp != P else planes_flat
    grid_p = Pp // pb
    vmem_est = pb * per_plane + const_bytes

    out = pl.pallas_call(
        _pyramid_kron_kernel,
        out_shape=jax.ShapeDtypeStruct((Pp, Np), out_dtype),
        grid=(grid_p,),
        in_specs=[
            pl.BlockSpec((pb, F), lambda i: (i, 0)),
            _const_spec((F, Np), lambda i: (0, 0), grid_p > 1),
        ],
        out_specs=pl.BlockSpec((pb, Np), lambda i: (i, 0)),
        compiler_params=_mosaic_params(vmem_est),
    )(xp, kron_mat)
    return out[:P] if Pp != P else out


# ----------------------------------------------------------------------------
# Pallas kernel 2b: separable resize fallback for large images (not exercised
# at toy sizes). Two 2-D contractions per unique level, packed lane-dense store.
# ----------------------------------------------------------------------------
def _make_separable_kernel(n_unique, pb, hi, wi, sizes, offsets):
    def kernel(*refs):
        x_ref = refs[0]
        mats = refs[1:1 + 2 * n_unique]
        o_ref = refs[1 + 2 * n_unique]
        x = x_ref[...].astype(jnp.float32).reshape(pb * hi, wi)
        for k in range(n_unique):
            ho, wo = sizes[k]
            ah = mats[2 * k][...]                        # (Ho, Hi)
            awT = mats[2 * k + 1][...]                   # (Wi, Wo)
            # W contraction: one large 2-D MXU matmul over all planes at once.
            t = jnp.dot(x, awT, preferred_element_type=jnp.float32)      # (pb*Hi, Wo)
            t = t.reshape(pb, hi, wo)
            # H contraction without materializing pb copies of Ah.
            y = jnp.einsum('oh,phw->pow', ah, t, preferred_element_type=jnp.float32)
            # Lane-dense store into the packed output slab (offsets are static
            # multiples of the per-level sizes; multiples of 128 at prod sizes).
            o_ref[:, offsets[k]:offsets[k] + ho * wo] = \
                y.reshape(pb, ho * wo).astype(o_ref.dtype)
            # TODO(synk): for very large pyramids also tile the output columns.
    return kernel


def pyramid_resize_separable(planes_flat, ah_list, awT_list, sizes, offsets,
                             np_padded, in_hw, out_dtype):
    P, F = planes_flat.shape
    hi, wi = in_hw
    assert F == hi * wi
    n_unique = len(sizes)

    const_bytes = 4 * sum(ho * hi + wi * wo for ho, wo in sizes)
    wmax = max(wo for _, wo in sizes)
    per_plane = 4 * (2 * (F + np_padded) + hi * wmax)
    pb_max = max((_VMEM_BLOCK_BUDGET - const_bytes) // per_plane, _SUBLANE)
    pb = P if P <= pb_max else max((pb_max // _SUBLANE) * _SUBLANE, _SUBLANE)
    Pp = _round_up(P, pb)
    xp = jnp.pad(planes_flat, ((0, Pp - P), (0, 0))) if Pp != P else planes_flat
    grid_p = Pp // pb
    vmem_est = pb * per_plane + const_bytes

    kernel = _make_separable_kernel(n_unique, pb, hi, wi, sizes, offsets)
    in_specs = [pl.BlockSpec((pb, F), lambda i: (i, 0))]
    operands = [xp]
    for ah, awT in zip(ah_list, awT_list):
        in_specs.append(_const_spec(ah.shape, lambda i: (0, 0), grid_p > 1))
        in_specs.append(_const_spec(awT.shape, lambda i: (0, 0), grid_p > 1))
        operands.extend([ah, awT])

    out = pl.pallas_call(
        kernel,
        out_shape=jax.ShapeDtypeStruct((Pp, np_padded), out_dtype),
        grid=(grid_p,),
        in_specs=in_specs,
        out_specs=pl.BlockSpec((pb, np_padded), lambda i: (i, 0)),
        compiler_params=_mosaic_params(vmem_est),
    )(*operands)
    return out[:P] if Pp != P else out


# ----------------------------------------------------------------------------
# EncoderIPA wrapper (parameters + method glue around the Pallas kernels)
# ----------------------------------------------------------------------------
class EncoderIPAPallas:
    def __init__(self, key, image_size=(16, 16), embedding_dim=60,
                 num_sampling_level=3, nhist=3, fps_subsampling_factor=5,
                 history_as_point=True):
        self.image_size = image_size
        self.num_sampling_level = num_sampling_level
        self.fps_subsampling_factor = fps_subsampling_factor
        self.history_as_point = history_as_point
        self.embedding_dim = embedding_dim

        k1, k2, k3, k4 = jax.random.split(key, 4)
        # nn.Linear(512, embedding_dim): store weight as (in, out)
        self.instr_w = jax.random.normal(k1, (512, embedding_dim), jnp.float32) * 0.02
        self.instr_b = jax.random.normal(k2, (embedding_dim,), jnp.float32) * 0.02
        # Lane-dense padded copies used by the Pallas matmul (pad N=60 -> 128).
        n_pad = _round_up(embedding_dim, _LANE)
        self.instr_w_pad = jnp.zeros((512, n_pad), jnp.float32).at[:, :embedding_dim].set(self.instr_w)
        self.instr_b_pad = jnp.zeros((1, n_pad), jnp.float32).at[0, :embedding_dim].set(self.instr_b)

        # nn.Embedding(nhist, embedding_dim) / nn.Embedding(1, embedding_dim)
        self.curr_gripper_embed = jax.random.normal(k3, (nhist, embedding_dim),
                                                    jnp.float32) * 0.02
        self.goal_gripper_embed = jax.random.normal(k4, (1, embedding_dim),
                                                    jnp.float32) * 0.02

        # feature-map strides for the (256,256) config: ['res3','res1','res1','res1']
        # with downscaling [8, 2, 2, 2] -> strides 8, 2, 2, 2 relative to input
        H, W = image_size
        strides = [8, 2, 2, 2]
        self.pyramid_sizes = [(max(H // strides[i], 1), max(W // strides[i], 1))
                              for i in range(num_sampling_level)]

        # Deduplicate identical pyramid levels; fix a packed lane layout.
        self._unique_sizes = []
        self._level_to_unique = []
        for s in self.pyramid_sizes:
            if s not in self._unique_sizes:
                self._unique_sizes.append(s)
            self._level_to_unique.append(self._unique_sizes.index(s))
        self._pack_offsets = []
        off = 0
        for ho, wo in self._unique_sizes:
            self._pack_offsets.append(off)
            off += ho * wo
        self._np_raw = off
        self._np_padded = _round_up(off, _LANE)

        # Fused Kronecker operator for small images; separable path otherwise.
        kron_bytes = 4 * H * W * self._np_padded
        self._use_kron = kron_bytes <= _KRON_BYTES_LIMIT
        if self._use_kron:
            M = np.zeros((H * W, self._np_padded), np.float32)
            for (ho, wo), o in zip(self._unique_sizes, self._pack_offsets):
                Ah = _interp_matrix_np(ho, H)                 # (Ho, Hi)
                Aw = _interp_matrix_np(wo, W)                 # (Wo, Wi)
                M[:, o:o + ho * wo] = np.kron(Ah, Aw).T       # (Hi*Wi, Ho*Wo)
            self._kron_mat = jnp.asarray(M)
            self._ah_list = None
            self._awT_list = None
        else:
            self._kron_mat = None
            self._ah_list = [jnp.asarray(_interp_matrix_np(ho, H))
                             for (ho, wo) in self._unique_sizes]          # (Ho, Hi)
            self._awT_list = [jnp.asarray(_interp_matrix_np(wo, W)).T
                              for (ho, wo) in self._unique_sizes]         # (Wi, Wo)

    # ---- encode_instruction : Pallas linear (lane-dense, padded to 128) ----
    def encode_instruction(self, instruction):
        B, L, C = instruction.shape
        assert C == 512
        out = linear_pallas_padded(instruction.reshape(B * L, C),
                                   self.instr_w_pad, self.instr_b_pad)
        return out[:, :self.embedding_dim].reshape(B, L, self.embedding_dim)

    # ---- encode_images : fused Pallas bilinear resize of pcd ---------------
    def encode_images(self, rgb, pcd):
        B, ncam, c, H, W = pcd.shape
        # Contiguous flatten in HBM -> lane-dense (P, Hi*Wi) input block.
        planes = pcd.reshape(B * ncam * c, H * W)
        # TODO(synk): CLIP/ResNet backbone + FeaturePyramidNetwork are external
        # modules with no in-script definition; rgb_feats_pyramid not produced.
        rgb_feats_pyramid = None

        if self._use_kron:
            packed = pyramid_resize_kron(planes, self._kron_mat, pcd.dtype)
        else:
            packed = pyramid_resize_separable(planes, self._ah_list, self._awT_list,
                                              self._unique_sizes, self._pack_offsets,
                                              self._np_padded, (H, W), pcd.dtype)

        pcd_pyramid = []
        cache = {}
        for lvl in range(self.num_sampling_level):
            u = self._level_to_unique[lvl]
            if u not in cache:
                ho, wo = self._unique_sizes[u]
                o = self._pack_offsets[u]
                # '(bt ncam) c h w -> bt (ncam h w) c' done on the small,
                # already-resized array (wrapper-side layout plumbing).
                y = packed[:, o:o + ho * wo].reshape(B, ncam, c, ho, wo)
                y = jnp.transpose(y, (0, 1, 3, 4, 2)).reshape(B, ncam * ho * wo, c)
                cache[u] = y
            pcd_pyramid.append(cache[u])
        return rgb_feats_pyramid, pcd_pyramid

    # ---- encode_curr_gripper ------------------------------------------------
    def encode_curr_gripper(self, curr_gripper, context_feats, context):
        B = curr_gripper.shape[0]
        gripper_feats = jnp.broadcast_to(
            self.curr_gripper_embed[None], (B,) + self.curr_gripper_embed.shape)
        gripper_pos = curr_gripper[..., :3]
        npt = gripper_pos.shape[1]
        gripper_rot = jnp.zeros((B, npt, 3, 3), jnp.float32)
        del gripper_pos, gripper_rot
        # TODO(synk): gripper_context_head (InvariantPointTransformer with
        # EfficientInvariantPointAttention, use_adaln=True) is external; its
        # forward is not defined in this file, so it is not reproduced here.
        return gripper_feats

    # ---- vision_language_attention ------------------------------------------
    def vision_language_attention(self, feats, instr_feats):
        # TODO(synk): ParallelAttention layer is an external module with no
        # in-script definition; cross-attention hot path not reproduced.
        return feats

    # ---- run_fps -------------------------------------------------------------
    def run_fps(self, context_features, context_pcd):
        # TODO(synk): farthest-point-sampling (fps) is an external op; not reproduced.
        return context_features, context_pcd


# ----------------------------------------------------------------------------
if __name__ == "__main__":
    key = jax.random.PRNGKey(0)
    k_enc, k_instr, k_pcd, k_rgb, k_grip = jax.random.split(key, 5)

    enc = EncoderIPAPallas(k_enc, image_size=(16, 16), embedding_dim=60,
                           num_sampling_level=3, nhist=3)

    B, L = 2, 53                      # instruction: (B, max_instruction_length, 512)
    ncam, H, W = 1, 16, 16

    instruction = jax.random.normal(k_instr, (B, L, 512), jnp.float32)
    pcd = jax.random.normal(k_pcd, (B, ncam, 3, H, W), jnp.float32)
    rgb = jax.random.normal(k_rgb, (B, ncam, 3, H, W), jnp.float32)
    curr_gripper = jax.random.normal(k_grip, (B, 3, 8), jnp.float32)

    # ---- run Pallas kernels ----
    instr_feats = enc.encode_instruction(instruction)
    _, pcd_pyramid = enc.encode_images(rgb, pcd)
    gripper_feats = enc.encode_curr_gripper(curr_gripper, None, None)

    jax.block_until_ready(instr_feats)
    jax.block_until_ready(pcd_pyramid)
    jax.block_until_ready(gripper_feats)

    # ---- correctness checks ----
    # 1) instruction encoder vs plain XLA linear
    ref_instr = instruction.reshape(B * L, 512) @ enc.instr_w + enc.instr_b
    assert instr_feats.shape == (B, L, 60)
    assert jnp.allclose(instr_feats.reshape(B * L, -1), ref_instr,
                        atol=1e-4, rtol=1e-4)

    # 2a) fused Kronecker operator == per-axis bilinear (exact, host float64)
    assert enc._use_kron
    planes64 = np.asarray(pcd, np.float64).reshape(B * ncam * 3, H, W)
    kron64 = np.asarray(enc._kron_mat, np.float64)
    packed64 = planes64.reshape(-1, H * W) @ kron64
    for u, (ho, wo) in enumerate(enc._unique_sizes):
        Ah = _interp_matrix_np(ho, H).astype(np.float64)
        Aw = _interp_matrix_np(wo, W).astype(np.float64)
        direct = np.einsum("oh,nhw,qw->noq", Ah, planes64, Aw)
        off = enc._pack_offsets[u]
        assert np.allclose(direct.reshape(-1, ho * wo),
                           packed64[:, off:off + ho * wo], atol=1e-9)

    # 2b) Pallas kernel output vs the identical matmul run through plain XLA
    planes_dev = pcd.reshape(B * ncam * 3, H * W)
    ref_packed = planes_dev @ enc._kron_mat
    for lvl in range(enc.num_sampling_level):
        u = enc._level_to_unique[lvl]
        ho, wo = enc._unique_sizes[u]
        off = enc._pack_offsets[u]
        ref = ref_packed[:, off:off + ho * wo].reshape(B, ncam, 3, ho, wo)
        ref = jnp.transpose(ref, (0, 1, 3, 4, 2)).reshape(B, ncam * ho * wo, 3)
        assert pcd_pyramid[lvl].shape == ref.shape
        assert jnp.allclose(pcd_pyramid[lvl], ref, atol=1e-4, rtol=1e-4)

    # 3) levels 1 and 2 are identical for this config: deduplicated (same array)
    assert pcd_pyramid[1] is pcd_pyramid[2]
    assert gripper_feats.shape == (B, 3, 60)

    print("KERNEL_OK")
</pallas_src>

<mosaic_0001>
module attributes {stable_mosaic.version = 11 : i64} {
  func.func @_linear_kernel(%arg0: i32, %arg1: memref<112x512xf32, #tpu.memory_space<vmem>>, %arg2: memref<512x128xf32, #tpu.memory_space<vmem>>, %arg3: memref<1x128xf32, #tpu.memory_space<vmem>>, %arg4: memref<112x128xf32, #tpu.memory_space<vmem>>) attributes {dimension_semantics = [#tpu.dimension_semantics<parallel>], iteration_bounds = array<i64: 1>, scalar_prefetch = 0 : i64, scratch_operands = 0 : i64, tpu.core_type = #tpu.core_type<tc>, window_params = [{transform_indices = @transform_0, window_bounds = array<i64: 112, 512>}, {pipeline_mode = #tpu.pipeline_mode<synchronous>, transform_indices = @transform_1, window_bounds = array<i64: 512, 128>}, {pipeline_mode = #tpu.pipeline_mode<synchronous>, transform_indices = @transform_2, window_bounds = array<i64: 1, 128>}, {transform_indices = @transform_3, window_bounds = array<i64: 112, 128>}]} {
    %c0 = arith.constant 0 : index
    %c0_0 = arith.constant 0 : index
    %0 = vector.load %arg1[%c0, %c0_0] : memref<112x512xf32, #tpu.memory_space<vmem>>, vector<112x512xf32>
    %c0_1 = arith.constant 0 : index
    %c0_2 = arith.constant 0 : index
    %1 = vector.load %arg2[%c0_1, %c0_2] : memref<512x128xf32, #tpu.memory_space<vmem>>, vector<512x128xf32>
    %cst = arith.constant dense<0.000000e+00> : vector<112x128xf32>
    %2 = tpu.matmul %0, %1, %cst {dimension_numbers = #tpu.dot_dimension_numbers<[1], [0], [0], [1], [0, 0, 1, 1], [], []>} : vector<112x512xf32>, vector<512x128xf32>, vector<112x128xf32> -> vector<112x128xf32>
    %c0_3 = arith.constant 0 : index
    %c0_4 = arith.constant 0 : index
    %3 = vector.load %arg3[%c0_3, %c0_4] : memref<1x128xf32, #tpu.memory_space<vmem>>, vector<1x128xf32>
    %4 = vector.broadcast %3 : vector<1x128xf32> to vector<112x128xf32>
    %5 = arith.addf %2, %4 : vector<112x128xf32>
    %c0_5 = arith.constant 0 : index
    %c0_6 = arith.constant 0 : index
    %6 = vector.load %arg4[%c0_5, %c0_6] : memref<112x128xf32, #tpu.memory_space<vmem>>, vector<112x128xf32>
    tpu.vector_store %arg4[%c0_5, %c0_6], %5 {strides = array<i32>} : memref<112x128xf32, #tpu.memory_space<vmem>>, vector<112x128xf32>,
    return
  }
  func.func @transform_0(%arg0: i32) -> (i32, i32) {
    %c0_i32 = arith.constant 0 : i32
    %c0_i32_0 = arith.constant 0 : i32
    return %arg0, %c0_i32 : i32, i32
  }
  func.func @transform_1(%arg0: i32) -> (i32, i32) {
    %c0_i32 = arith.constant 0 : i32
    %c0_i32_0 = arith.constant 0 : i32
    %c0_i32_1 = arith.constant 0 : i32
    return %c0_i32, %c0_i32_0 : i32, i32
  }
  func.func @transform_2(%arg0: i32) -> (i32, i32) {
    %c0_i32 = arith.constant 0 : i32
    %c0_i32_0 = arith.constant 0 : i32
    %c0_i32_1 = arith.constant 0 : i32
    return %c0_i32, %c0_i32_0 : i32, i32
  }
  func.func @transform_3(%arg0: i32) -> (i32, i32) {
    %c0_i32 = arith.constant 0 : i32
    %c0_i32_0 = arith.constant 0 : i32
    return %arg0, %c0_i32 : i32, i32
  }
}

</mosaic_0001>

<bundles_post_ra>
// kernel: tpu_custom_call.1
= control target key start
LH: loop header
LB: loop body
LE: loop exit
PB: predicated region body
PF: predicated region fallthrough
CT: control target
= control target key end

     0   :  { %8 = vsyncpa [#allocation3], 0  ;;  %s755_s0 = inlined_call_operand.hbm [shape: f32[112,512], index: 0, kind: input, shape index: {}]   ;;  %s756_s1 = inlined_call_operand.hbm [shape: f32[512,128], index: 1, kind: input, shape index: {}]   ;;  %s757_s2 = inlined_call_operand.vmem [shape: f32[1,128], index: 2, kind: input, shape index: {}]   ;;  %s758_s3 = inlined_call_operand.hbm [shape: f32[112,128], index: 3, kind: output, shape index: {}]  }
   0x1   :  { %9 = vsyncpa [#allocation6], 0 }
   0x2   :  { %10 = vsyncpa [#allocation4], 0  ;;  %s694_s12 = smov [#allocation2]  }
   0x3   :  { %s16_s13 = sshll.u32 %s694_s12, 4  ;;  %s17_s13 = int_to_ptr.vmem [resolvable:$true] %s16_s13 }
   0x4   :  { %s636_s14 = scalar_lea.vmem %s17_s13, 7168  ;;  %p641_p1 = scmp.lt.s32.totalorder %s17_s13, %s17_s13 }
   0x5   :  { %p637_p0 = scmp.ne.s32.totalorder %s17_s13, %s636_s14  ;;  %p642_p2 = scmp.lt.s32.totalorder %s636_s14, %s636_s14 }
   0x7   :  { %p643_p3 = por %p642_p2, %p641_p1 }
   0x9   :  { %p644_p4 = pnand %p643_p3, %p637_p0 }
   0xb   :  { %647 = shalt.err (!%p644_p4)
}
   0xc   :  { %s695_s15 = smov 512   ;;  %s696_s16 = smov 32  }
   0xd   :  { %22 = dma.hbm_to_vmem [thread:$0]  %s755_s0, 7168, %s17_s13, [#allocation3], %s695_s15, %s695_s15, %s696_s16  }
   0xe   :  { %s697_s19 = smov [#allocation5]  }
   0xf   :  { %s28_s20 = sshll.u32 %s697_s19, 4  ;;  %s29_s20 = int_to_ptr.vmem [resolvable:$true] %s28_s20 }
  0x10   :  { %s656_s21 = scalar_lea.vmem %s29_s20, 8192  ;;  %p661_p6 = scmp.lt.s32.totalorder %s29_s20, %s29_s20 }
  0x11   :  { %p657_p5 = scmp.ne.s32.totalorder %s29_s20, %s656_s21  ;;  %p662_p7 = scmp.lt.s32.totalorder %s656_s21, %s656_s21 }
  0x13   :  { %p663_p8 = por %p662_p7, %p661_p6 }
  0x15   :  { %p664_p9 = pnand %p663_p8, %p657_p5 }
  0x17   :  { %667 = shalt.err (!%p664_p9)
}
  0x18   :  { %s698_s22 = smov 128   ;;  %s699_s23 = smov 8  }
  0x19   :  { %34 = dma.hbm_to_vmem [thread:$0]  %s756_s1, 8192, %s29_s20, [#allocation6], %s698_s22, %s698_s22, %s699_s23  }
  0x1a   :  { %688 = dma.done.wait [#allocation3], 7168  }
  0x1b   :  { %689 = vsyncadd [#allocation3], 4294960128 }
  0x1c   :  { %690 = dma.done.wait [#allocation6], 8192  }
  0x1d   :  { %691 = vsyncadd [#allocation6], 4294959104  ;;  %v130_v0 = vld [vmem:[#allocation5 + $0xf8] sm:$0xff]  ;;  %v129_v4 = vld [vmem:[#allocation5 + $0xf0] sm:$0xff] }
  0x1e   :  { %v162_v1 = vld [vmem:[#allocation5 + $0x1f8] sm:$0xff]  ;;  %473 = vmatprep.subr.mxu0 %v130_v0  ;;  %v161_v5 = vld [vmem:[#allocation5 + $0x1f0] sm:$0xff]  ;;  %v128_v8 = vld [vmem:[#allocation5 + $0xe8] sm:$0xff] }
  0x1f   :  { %v114_v2 = vld [vmem:[#allocation5 + $0x78] sm:$0xff]  ;;  %547 = vmatprep.subr.mxu1 %v162_v1  ;;  %v113_v6 = vld [vmem:[#allocation5 + $0x70] sm:$0xff]  ;;  %v160_v9 = vld [vmem:[#allocation5 + $0x1e8] sm:$0xff] }
  0x20   :  { %v146_v3 = vld [vmem:[#allocation5 + $0x178] sm:$0xff]  ;;  %474 = vmatpush3.msra.mxu0 %v114_v2  ;;  %v145_v7 = vld [vmem:[#allocation5 + $0x170] sm:$0xff]  ;;  %v112_v10 = vld [vmem:[#allocation5 + $0x68] sm:$0xff] }
  0x21   :  { %548 = vmatpush3.msra.mxu1 %v146_v3  ;;  %475 = vmatprep.subr.mxu0 %v129_v4  ;;  %v144_v11 = vld [vmem:[#allocation5 + $0x168] sm:$0xff]  ;;  %v127_v12 = vld [vmem:[#allocation5 + $0xe0] sm:$0xff]  ;;  %v126_v16 = vld [vmem:[#allocation5 + $0xd8] sm:$0xff] }
  0x22   :  { %549 = vmatprep.subr.mxu1 %v161_v5  ;;  %476 = vmatpush3.msra.mxu0 %v113_v6  ;;  %v159_v13 = vld [vmem:[#allocation5 + $0x1e0] sm:$0xff]  ;;  %v158_v17 = vld [vmem:[#allocation5 + $0x1d8] sm:$0xff]  ;;  %v125_v20 = vld [vmem:[#allocation5 + $0xd0] sm:$0xff] }
  0x23   :  { %550 = vmatpush3.msra.mxu1 %v145_v7  ;;  %477 = vmatprep.subr.mxu0 %v128_v8  ;;  %v111_v14 = vld [vmem:[#allocation5 + $0x60] sm:$0xff]  ;;  %v110_v18 = vld [vmem:[#allocation5 + $0x58] sm:$0xff]  ;;  %v157_v21 = vld [vmem:[#allocation5 + $0x1d0] sm:$0xff] }
  0x24   :  { %551 = vmatprep.subr.mxu1 %v160_v9  ;;  %v143_v15 = vld [vmem:[#allocation5 + $0x160] sm:$0xff]  ;;  %478 = vmatpush3.msra.mxu0 %v112_v10  ;;  %v142_v19 = vld [vmem:[#allocation5 + $0x158] sm:$0xff]  ;;  %v109_v22 = vld [vmem:[#allocation5 + $0x50] sm:$0xff] }
  0x25   :  { %552 = vmatpush3.msra.mxu1 %v144_v11  ;;  %479 = vmatprep.subr.mxu0 %v127_v12  ;;  %v141_v23 = vld [vmem:[#allocation5 + $0x150] sm:$0xff]  ;;  %v124_v24 = vld [vmem:[#allocation5 + $0xc8] sm:$0xff]  ;;  %v123_v28 = vld [vmem:[#allocation5 + $0xc0] sm:$0xff] }
  0x26   :  { %553 = vmatprep.subr.mxu1 %v159_v13  ;;  %480 = vmatpush3.msra.mxu0 %v111_v14  ;;  %v156_v25 = vld [vmem:[#allocation5 + $0x1c8] sm:$0xff]  ;;  %v155_v29 = vld [vmem:[#allocation5 + $0x1c0] sm:$0xff]  ;;  %v122_v32 = vld [vmem:[#allocation5 + $0xb8] sm:$0xff] }
  0x27   :  { %554 = vmatpush3.msra.mxu1 %v143_v15  ;;  %481 = vmatprep.subr.mxu0 %v126_v16  ;;  %v108_v26 = vld [vmem:[#allocation5 + $0x48] sm:$0xff]  ;;  %v107_v30 = vld [vmem:[#allocation5 + $0x40] sm:$0xff]  ;;  %v154_v33 = vld [vmem:[#allocation5 + $0x1b8] sm:$0xff] }
  0x28   :  { %555 = vmatprep.subr.mxu1 %v158_v17  ;;  %482 = vmatpush3.msra.mxu0 %v110_v18  ;;  %v140_v27 = vld [vmem:[#allocation5 + $0x148] sm:$0xff]  ;;  %v139_v31 = vld [vmem:[#allocation5 + $0x140] sm:$0xff]  ;;  %v106_v34 = vld [vmem:[#allocation5 + $0x38] sm:$0xff] }
  0x29   :  { %556 = vmatpush3.msra.mxu1 %v142_v19  ;;  %483 = vmatprep.subr.mxu0 %v125_v20  ;;  %v138_v35 = vld [vmem:[#allocation5 + $0x138] sm:$0xff]  ;;  %v121_v36 = vld [vmem:[#allocation5 + $0xb0] sm:$0xff]  ;;  %v120_v40 = vld [vmem:[#allocation5 + $0xa8] sm:$0xff] }
  0x2a   :  { %557 = vmatprep.subr.mxu1 %v157_v21  ;;  %484 = vmatpush3.msra.mxu0 %v109_v22  ;;  %v153_v37 = vld [vmem:[#allocation5 + $0x1b0] sm:$0xff]  ;;  %v152_v41 = vld [vmem:[#allocation5 + $0x1a8] sm:$0xff]  ;;  %v119_v44 = vld [vmem:[#allocation5 + $0xa0] sm:$0xff] }
  0x2b   :  { %558 = vmatpush3.msra.mxu1 %v141_v23  ;;  %485 = vmatprep.subr.mxu0 %v124_v24  ;;  %v105_v38 = vld [vmem:[#allocation5 + $0x30] sm:$0xff]  ;;  %v104_v42 = vld [vmem:[#allocation5 + $0x28] sm:$0xff]  ;;  %v151_v45 = vld [vmem:[#allocation5 + $0x1a0] sm:$0xff] }
  0x2c   :  { %559 = vmatprep.subr.mxu1 %v156_v25  ;;  %486 = vmatpush3.msra.mxu0 %v108_v26  ;;  %v137_v39 = vld [vmem:[#allocation5 + $0x130] sm:$0xff]  ;;  %v136_v43 = vld [vmem:[#allocation5 + $0x128] sm:$0xff]  ;;  %v103_v46 = vld [vmem:[#allocation5 + $0x20] sm:$0xff] }
  0x2d   :  { %560 = vmatpush3.msra.mxu1 %v140_v27  ;;  %487 = vmatprep.subr.mxu0 %v123_v28  ;;  %v135_v47 = vld [vmem:[#allocation5 + $0x120] sm:$0xff]  ;;  %v118_v48 = vld [vmem:[#allocation5 + $0x98] sm:$0xff]  ;;  %v117_v52 = vld [vmem:[#allocation5 + $0x90] sm:$0xff] }
  0x2e   :  { %561 = vmatprep.subr.mxu1 %v155_v29  ;;  %488 = vmatpush3.msra.mxu0 %v107_v30  ;;  %v150_v49 = vld [vmem:[#allocation5 + $0x198] sm:$0xff]  ;;  %v149_v53 = vld [vmem:[#allocation5 + $0x190] sm:$0xff]  ;;  %v116_v56 = vld [vmem:[#allocation5 + $0x88] sm:$0xff] }
  0x2f   :  { %562 = vmatpush3.msra.mxu1 %v139_v31  ;;  %489 = vmatprep.subr.mxu0 %v122_v32  ;;  %v102_v50 = vld [vmem:[#allocation5 + $0x18] sm:$0xff]  ;;  %v101_v54 = vld [vmem:[#allocation5 + $0x10] sm:$0xff]  ;;  %v148_v57 = vld [vmem:[#allocation5 + $0x188] sm:$0xff] }
  0x30   :  { %563 = vmatprep.subr.mxu1 %v154_v33  ;;  %490 = vmatpush3.msra.mxu0 %v106_v34  ;;  %v134_v51 = vld [vmem:[#allocation5 + $0x118] sm:$0xff]  ;;  %v133_v55 = vld [vmem:[#allocation5 + $0x110] sm:$0xff]  ;;  %v100_v58 = vld [vmem:[#allocation5 + $0x8] sm:$0xff] }
  0x31   :  { %564 = vmatpush3.msra.mxu1 %v138_v35  ;;  %491 = vmatprep.subr.mxu0 %v121_v36  ;;  %v132_v59 = vld [vmem:[#allocation5 + $0x108] sm:$0xff]  ;;  %v115_v60 = vld [vmem:[#allocation5 + $0x80] sm:$0xff]  ;;  %v46_v1 = vld [vmem:[#allocation2 + $0x18] sm:$0xff] }
  0x32   :  { %565 = vmatprep.subr.mxu1 %v153_v37  ;;  %492 = vmatpush3.msra.mxu0 %v105_v38  ;;  %v147_v61 = vld [vmem:[#allocation5 + $0x180] sm:$0xff]  ;;  %v44_v63 = vld [vmem:[#allocation2 + $0x8] sm:$0xff]  ;;  %v45_v3 = vld [vmem:[#allocation2 + $0x10] sm:$0xff] }
  0x33   :  { %566 = vmatpush3.msra.mxu1 %v137_v39  ;;  %493 = vmatprep.subr.mxu0 %v120_v40  ;;  %v99_v62 = vld [vmem:[#allocation5] sm:$0xff]  ;;  %v48_v4 = vld [vmem:[#allocation2 + $0x28] sm:$0xff]  ;;  %v50_v5 = vld [vmem:[#allocation2 + $0x38] sm:$0xff] }
  0x34   :  { %567 = vmatprep.subr.mxu1 %v152_v41  ;;  %494 = vmatpush3.msra.mxu0 %v104_v42  ;;  %v131_v0 = vld [vmem:[#allocation5 + $0x100] sm:$0xff]  ;;  %v49_v7 = vld [vmem:[#allocation2 + $0x30] sm:$0xff]  ;;  %v52_v8 = vld [vmem:[#allocation2 + $0x48] sm:$0xff] }
  0x35   :  { %568 = vmatpush3.msra.mxu1 %v136_v43  ;;  %495 = vmatprep.subr.mxu0 %v119_v44  ;;  %v43_v2 = vld [vmem:[#allocation2] sm:$0xff]  ;;  %v54_v9 = vld [vmem:[#allocation2 + $0x58] sm:$0xff]  ;;  %v53_v11 = vld [vmem:[#allocation2 + $0x50] sm:$0xff] }
  0x36   :  { %569 = vmatprep.subr.mxu1 %v151_v45  ;;  %496 = vmatpush3.msra.mxu0 %v103_v46  ;;  %v47_v6 = vld [vmem:[#allocation2 + $0x20] sm:$0xff]  ;;  %v56_v12 = vld [vmem:[#allocation2 + $0x68] sm:$0xff]  ;;  %v58_v13 = vld [vmem:[#allocation2 + $0x78] sm:$0xff] }
  0x37   :  { %570 = vmatpush3.msra.mxu1 %v135_v47  ;;  %497 = vmatprep.subr.mxu0 %v118_v48  ;;  %v51_v10 = vld [vmem:[#allocation2 + $0x40] sm:$0xff]  ;;  %v57_v15 = vld [vmem:[#allocation2 + $0x70] sm:$0xff]  ;;  %v60_v16 = vld [vmem:[#allocation2 + $0x88] sm:$0xff] }
  0x38   :  { %571 = vmatprep.subr.mxu1 %v150_v49  ;;  %498 = vmatpush3.msra.mxu0 %v102_v50  ;;  %v55_v14 = vld [vmem:[#allocation2 + $0x60] sm:$0xff]  ;;  %v62_v17 = vld [vmem:[#allocation2 + $0x98] sm:$0xff]  ;;  %v61_v19 = vld [vmem:[#allocation2 + $0x90] sm:$0xff] }
  0x39   :  { %572 = vmatpush3.msra.mxu1 %v134_v51  ;;  %499 = vmatprep.subr.mxu0 %v117_v52  ;;  %v59_v18 = vld [vmem:[#allocation2 + $0x80] sm:$0xff]  ;;  %v64_v20 = vld [vmem:[#allocation2 + $0xa8] sm:$0xff]  ;;  %v66_v21 = vld [vmem:[#allocation2 + $0xb8] sm:$0xff] }
  0x3a   :  { %573 = vmatprep.subr.mxu1 %v149_v53  ;;  %500 = vmatpush3.msra.mxu0 %v101_v54  ;;  %v63_v22 = vld [vmem:[#allocation2 + $0xa0] sm:$0xff]  ;;  %v65_v23 = vld [vmem:[#allocation2 + $0xb0] sm:$0xff]  ;;  %v68_v24 = vld [vmem:[#allocation2 + $0xc8] sm:$0xff] }
  0x3b   :  { %574 = vmatpush3.msra.mxu1 %v133_v55  ;;  %501 = vmatprep.subr.mxu0 %v116_v56  ;;  %v70_v25 = vld [vmem:[#allocation2 + $0xd8] sm:$0xff]  ;;  %v67_v26 = vld [vmem:[#allocation2 + $0xc0] sm:$0xff]  ;;  %v69_v27 = vld [vmem:[#allocation2 + $0xd0] sm:$0xff] }
  0x3c   :  { %575 = vmatprep.subr.mxu1 %v148_v57  ;;  %502 = vmatpush3.msra.mxu0 %v100_v58  ;;  %v72_v28 = vld [vmem:[#allocation2 + $0xe8] sm:$0xff]  ;;  %v74_v29 = vld [vmem:[#allocation2 + $0xf8] sm:$0xff]  ;;  %v71_v30 = vld [vmem:[#allocation2 + $0xe0] sm:$0xff] }
  0x3d   :  { %576 = vmatpush3.msra.mxu1 %v132_v59  ;;  %503 = vmatprep.subr.mxu0 %v115_v60  ;;  %v73_v31 = vld [vmem:[#allocation2 + $0xf0] sm:$0xff]  ;;  %v76_v32 = vld [vmem:[#allocation2 + $0x108] sm:$0xff]  ;;  %v78_v33 = vld [vmem:[#allocation2 + $0x118] sm:$0xff] }
  0x3e   :  { %577 = vmatprep.subr.mxu1 %v147_v61  ;;  %504 = vmatpush3.msra.mxu0 %v99_v62  ;;  %v75_v34 = vld [vmem:[#allocation2 + $0x100] sm:$0xff]  ;;  %v77_v35 = vld [vmem:[#allocation2 + $0x110] sm:$0xff]  ;;  %v80_v36 = vld [vmem:[#allocation2 + $0x128] sm:$0xff] }
  0x3f   :  { %234 = vmatprep.mubr.f32.mxu0 %v44_v63  ;;  %578 = vmatpush3.msra.mxu1 %v131_v0  ;;  %v82_v37 = vld [vmem:[#allocation2 + $0x138] sm:$0xff]  ;;  %v79_v38 = vld [vmem:[#allocation2 + $0x120] sm:$0xff]  ;;  %v81_v39 = vld [vmem:[#allocation2 + $0x130] sm:$0xff] }
  0x40   :  { %369 = vmatprep.mubr.f32.mxu1 %v46_v1  ;;  %235 = vmatmul.mubr.f32.vlgmr.msra.gmra.mxu0 %v43_v2  ;;  %v84_v40 = vld [vmem:[#allocation2 + $0x148] sm:$0xff]  ;;  %v86_v41 = vld [vmem:[#allocation2 + $0x158] sm:$0xff]  ;;  %v83_v42 = vld [vmem:[#allocation2 + $0x140] sm:$0xff] }
  0x41   :  { %370 = vmatmul.mubr.f32.vlgmr.msra.gmra.mxu1 %v45_v3  ;;  %239 = vmatprep.mubr.f32.mxu0 %v48_v4  ;;  %v85_v43 = vld [vmem:[#allocation2 + $0x150] sm:$0xff]  ;;  %v88_v44 = vld [vmem:[#allocation2 + $0x168] sm:$0xff]  ;;  %v90_v45 = vld [vmem:[#allocation2 + $0x178] sm:$0xff] }
  0x42   :  { %374 = vmatprep.mubr.f32.mxu1 %v50_v5  ;;  %v87_v46 = vld [vmem:[#allocation2 + $0x160] sm:$0xff]  ;;  %v89_v47 = vld [vmem:[#allocation2 + $0x170] sm:$0xff]  ;;  %v92_v48 = vld [vmem:[#allocation2 + $0x188] sm:$0xff] }
  0x43   :  { %v94_v49 = vld [vmem:[#allocation2 + $0x198] sm:$0xff]  ;;  %v91_v50 = vld [vmem:[#allocation2 + $0x180] sm:$0xff]  ;;  %v93_v51 = vld [vmem:[#allocation2 + $0x190] sm:$0xff] }
  0x44   :  { %240 = vmatmul.mubr.f32.gmra.mxu0 %v47_v6  ;;  %v96_v52 = vld [vmem:[#allocation2 + $0x1a8] sm:$0xff]  ;;  %v98_v53 = vld [vmem:[#allocation2 + $0x1b8] sm:$0xff]  ;;  %v95_v54 = vld [vmem:[#allocation2 + $0x1a0] sm:$0xff] }
  0x45   :  { %375 = vmatmul.mubr.f32.gmra.mxu1 %v49_v7  ;;  %244 = vmatprep.mubr.f32.mxu0 %v52_v8  ;;  %v97_v55 = vld [vmem:[#allocation2 + $0x1b0] sm:$0xff]  ;;  %v733_v58 = vld [vmem:[%s757_s2] ss:$0 sm:$0xff]  ;;  %s700_s2 = smov [#allocation7]  }
  0x46   :  { %379 = vmatprep.mubr.f32.mxu1 %v54_v9  ;;  %s459_s26 = sshll.u32 %s700_s2, 4  ;;  %s460_s26 = int_to_ptr.vmem [resolvable:$true] %s459_s26 }
  0x47   :  { %s668_s27 = scalar_lea.vmem %s460_s26, 1792  ;;  %p673_p11 = scmp.lt.s32.totalorder %s460_s26, %s460_s26 }
  0x48   :  { %245 = vmatmul.mubr.f32.gmra.mxu0 %v51_v10  ;;  %p669_p10 = scmp.ne.s32.totalorder %s460_s26, %s668_s27  ;;  %p674_p12 = scmp.lt.s32.totalorder %s668_s27, %s668_s27 }
  0x49   :  { %380 = vmatmul.mubr.f32.gmra.mxu1 %v53_v11  ;;  %249 = vmatprep.mubr.f32.mxu0 %v56_v12 }
  0x4a   :  { %384 = vmatprep.mubr.f32.mxu1 %v58_v13  ;;  %p675_p13 = por %p674_p12, %p673_p11 }
  0x4c   :  { %250 = vmatmul.mubr.f32.gmra.mxu0 %v55_v14  ;;  %p676_p0 = pnand %p675_p13, %p669_p10 }
  0x4d   :  { %385 = vmatmul.mubr.f32.gmra.mxu1 %v57_v15  ;;  %254 = vmatprep.mubr.f32.mxu0 %v60_v16 }
  0x4e   :  { %389 = vmatprep.mubr.f32.mxu1 %v62_v17 }
  0x50   :  { %255 = vmatmul.mubr.f32.gmra.mxu0 %v59_v18 }
  0x51   :  { %390 = vmatmul.mubr.f32.gmra.mxu1 %v61_v19  ;;  %259 = vmatprep.mubr.f32.mxu0 %v64_v20 }
  0x52   :  { %394 = vmatprep.mubr.f32.mxu1 %v66_v21 }
  0x54   :  { %260 = vmatmul.mubr.f32.gmra.mxu0 %v63_v22 }
  0x55   :  { %395 = vmatmul.mubr.f32.gmra.mxu1 %v65_v23  ;;  %264 = vmatprep.mubr.f32.mxu0 %v68_v24 }
  0x56   :  { %399 = vmatprep.mubr.f32.mxu1 %v70_v25 }
  0x58   :  { %265 = vmatmul.mubr.f32.gmra.mxu0 %v67_v26 }
  0x59   :  { %400 = vmatmul.mubr.f32.gmra.mxu1 %v69_v27  ;;  %269 = vmatprep.mubr.f32.mxu0 %v72_v28 }
  0x5a   :  { %404 = vmatprep.mubr.f32.mxu1 %v74_v29 }
  0x5c   :  { %270 = vmatmul.mubr.f32.gmra.mxu0 %v71_v30 }
  0x5d   :  { %405 = vmatmul.mubr.f32.gmra.mxu1 %v73_v31  ;;  %274 = vmatprep.mubr.f32.mxu0 %v76_v32 }
  0x5e   :  { %409 = vmatprep.mubr.f32.mxu1 %v78_v33 }
  0x60   :  { %275 = vmatmul.mubr.f32.gmra.mxu0 %v75_v34 }
  0x61   :  { %410 = vmatmul.mubr.f32.gmra.mxu1 %v77_v35  ;;  %279 = vmatprep.mubr.f32.mxu0 %v80_v36 }
  0x62   :  { %414 = vmatprep.mubr.f32.mxu1 %v82_v37 }
  0x64   :  { %280 = vmatmul.mubr.f32.gmra.mxu0 %v79_v38 }
  0x65   :  { %415 = vmatmul.mubr.f32.gmra.mxu1 %v81_v39  ;;  %284 = vmatprep.mubr.f32.mxu0 %v84_v40 }
  0x66   :  { %419 = vmatprep.mubr.f32.mxu1 %v86_v41 }
  0x68   :  { %285 = vmatmul.mubr.f32.gmra.mxu0 %v83_v42 }
  0x69   :  { %420 = vmatmul.mubr.f32.gmra.mxu1 %v85_v43  ;;  %289 = vmatprep.mubr.f32.mxu0 %v88_v44 }
  0x6a   :  { %424 = vmatprep.mubr.f32.mxu1 %v90_v45 }
  0x6c   :  { %290 = vmatmul.mubr.f32.gmra.mxu0 %v87_v46 }
  0x6d   :  { %425 = vmatmul.mubr.f32.gmra.mxu1 %v89_v47  ;;  %294 = vmatprep.mubr.f32.mxu0 %v92_v48 }
  0x6e   :  { %429 = vmatprep.mubr.f32.mxu1 %v94_v49 }
  0x70   :  { %295 = vmatmul.mubr.f32.gmra.mxu0 %v91_v50 }
  0x71   :  { %430 = vmatmul.mubr.f32.gmra.mxu1 %v93_v51  ;;  %299 = vmatprep.mubr.f32.mxu0 %v96_v52 }
  0x72   :  { %434 = vmatprep.mubr.f32.mxu1 %v98_v53 }
  0x74   :  { %300 = vmatmul.mubr.f32.gmra.mxu0 %v95_v54 }
  0x75   :  { %435 = vmatmul.mubr.f32.gmra.mxu1 %v97_v55 }
 0x100   :  { %v505_v56 = vpop.f32.mrf.mxu0 }
 0x101   :  { %v579_v57 = vpop.f32.mrf.mxu1 }
 0x102   :  { %v506_v59 = vpop.f32.mrf.mxu0 }
 0x103   :  { %v580_v60 = vpop.f32.mrf.mxu1  ;;  %v507_v61 = vadd.f32 %v506_v59, %v505_v56 }
 0x104   :  { %v508_v62 = vpop.f32.mrf.mxu0  ;;  %v581_v1 = vadd.f32 %v580_v60, %v579_v57 }
 0x105   :  { %v582_v63 = vpop.f32.mrf.mxu1  ;;  %v237_v0 = vadd.f32 %v507_v61, %v733_v58 }
 0x106   :  { %v509_v2 = vpop.f32.mrf.mxu0 }
 0x107   :  { %v583_v3 = vpop.f32.mrf.mxu1  ;;  %v372_v4 = vadd.f32 %v581_v1, %v237_v0  ;;  %v510_v5 = vadd.f32 %v509_v2, %v508_v62 }
 0x108   :  { %v511_v6 = vpop.f32.mrf.mxu0  ;;  %v584_v9 = vadd.f32 %v583_v3, %v582_v63 }
 0x109   :  { %v585_v7 = vpop.f32.mrf.mxu1  ;;  %440 = vst [vmem:[#allocation7] sm:$0xff] %v372_v4  ;;  %v242_v8 = vadd.f32 %v510_v5, %v733_v58 }
 0x10a   :  { %v512_v10 = vpop.f32.mrf.mxu0 }
 0x10b   :  { %v586_v11 = vpop.f32.mrf.mxu1  ;;  %v377_v12 = vadd.f32 %v584_v9, %v242_v8  ;;  %v513_v13 = vadd.f32 %v512_v10, %v511_v6 }
 0x10c   :  { %v514_v14 = vpop.f32.mrf.mxu0  ;;  %v587_v17 = vadd.f32 %v586_v11, %v585_v7 }
 0x10d   :  { %v588_v15 = vpop.f32.mrf.mxu1  ;;  %441 = vst [vmem:[#allocation7 + $0x8] sm:$0xff] %v377_v12  ;;  %v247_v16 = vadd.f32 %v513_v13, %v733_v58 }
 0x10e   :  { %v515_v18 = vpop.f32.mrf.mxu0 }
 0x10f   :  { %v589_v19 = vpop.f32.mrf.mxu1  ;;  %v382_v20 = vadd.f32 %v587_v17, %v247_v16  ;;  %v516_v21 = vadd.f32 %v515_v18, %v514_v14 }
 0x110   :  { %v517_v22 = vpop.f32.mrf.mxu0  ;;  %v590_v25 = vadd.f32 %v589_v19, %v588_v15 }
 0x111   :  { %v591_v23 = vpop.f32.mrf.mxu1  ;;  %442 = vst [vmem:[#allocation7 + $0x10] sm:$0xff] %v382_v20  ;;  %v252_v24 = vadd.f32 %v516_v21, %v733_v58 }
 0x112   :  { %v518_v26 = vpop.f32.mrf.mxu0 }
 0x113   :  { %v592_v27 = vpop.f32.mrf.mxu1  ;;  %v387_v28 = vadd.f32 %v590_v25, %v252_v24  ;;  %v519_v29 = vadd.f32 %v518_v26, %v517_v22 }
 0x114   :  { %v520_v30 = vpop.f32.mrf.mxu0  ;;  %v593_v33 = vadd.f32 %v592_v27, %v591_v23 }
 0x115   :  { %v594_v31 = vpop.f32.mrf.mxu1  ;;  %443 = vst [vmem:[#allocation7 + $0x18] sm:$0xff] %v387_v28  ;;  %v257_v32 = vadd.f32 %v519_v29, %v733_v58 }
 0x116   :  { %v521_v34 = vpop.f32.mrf.mxu0 }
 0x117   :  { %v595_v35 = vpop.f32.mrf.mxu1  ;;  %v392_v36 = vadd.f32 %v593_v33, %v257_v32  ;;  %v522_v37 = vadd.f32 %v521_v34, %v520_v30 }
 0x118   :  { %v523_v38 = vpop.f32.mrf.mxu0  ;;  %v596_v41 = vadd.f32 %v595_v35, %v594_v31 }
 0x119   :  { %v597_v39 = vpop.f32.mrf.mxu1  ;;  %444 = vst [vmem:[#allocation7 + $0x20] sm:$0xff] %v392_v36  ;;  %v262_v40 = vadd.f32 %v522_v37, %v733_v58 }
 0x11a   :  { %v524_v42 = vpop.f32.mrf.mxu0 }
 0x11b   :  { %v598_v43 = vpop.f32.mrf.mxu1  ;;  %v397_v44 = vadd.f32 %v596_v41, %v262_v40  ;;  %v525_v45 = vadd.f32 %v524_v42, %v523_v38 }
 0x11c   :  { %v526_v46 = vpop.f32.mrf.mxu0  ;;  %v599_v49 = vadd.f32 %v598_v43, %v597_v39 }
 0x11d   :  { %v600_v47 = vpop.f32.mrf.mxu1  ;;  %445 = vst [vmem:[#allocation7 + $0x28] sm:$0xff] %v397_v44  ;;  %v267_v48 = vadd.f32 %v525_v45, %v733_v58 }
 0x11e   :  { %v527_v50 = vpop.f32.mrf.mxu0 }
 0x11f   :  { %v601_v51 = vpop.f32.mrf.mxu1  ;;  %v402_v52 = vadd.f32 %v599_v49, %v267_v48  ;;  %v528_v53 = vadd.f32 %v527_v50, %v526_v46 }
 0x120   :  { %v529_v54 = vpop.f32.mrf.mxu0  ;;  %v602_v57 = vadd.f32 %v601_v51, %v600_v47 }
 0x121   :  { %v603_v55 = vpop.f32.mrf.mxu1  ;;  %446 = vst [vmem:[#allocation7 + $0x30] sm:$0xff] %v402_v52  ;;  %v272_v56 = vadd.f32 %v528_v53, %v733_v58 }
 0x122   :  { %v530_v59 = vpop.f32.mrf.mxu0 }
 0x123   :  { %v604_v60 = vpop.f32.mrf.mxu1  ;;  %v407_v61 = vadd.f32 %v602_v57, %v272_v56  ;;  %v531_v62 = vadd.f32 %v530_v59, %v529_v54 }
 0x124   :  { %v532_v63 = vpop.f32.mrf.mxu0  ;;  %v605_v2 = vadd.f32 %v604_v60, %v603_v55 }
 0x125   :  { %v606_v0 = vpop.f32.mrf.mxu1  ;;  %447 = vst [vmem:[#allocation7 + $0x38] sm:$0xff] %v407_v61  ;;  %v277_v1 = vadd.f32 %v531_v62, %v733_v58 }
 0x126   :  { %v533_v3 = vpop.f32.mrf.mxu0 }
 0x127   :  { %v607_v4 = vpop.f32.mrf.mxu1  ;;  %v412_v5 = vadd.f32 %v605_v2, %v277_v1  ;;  %v534_v6 = vadd.f32 %v533_v3, %v532_v63 }
 0x128   :  { %v535_v7 = vpop.f32.mrf.mxu0  ;;  %v608_v10 = vadd.f32 %v607_v4, %v606_v0 }
 0x129   :  { %v609_v8 = vpop.f32.mrf.mxu1  ;;  %448 = vst [vmem:[#allocation7 + $0x40] sm:$0xff] %v412_v5  ;;  %v282_v9 = vadd.f32 %v534_v6, %v733_v58 }
 0x12a   :  { %v536_v11 = vpop.f32.mrf.mxu0 }
 0x12b   :  { %v610_v12 = vpop.f32.mrf.mxu1  ;;  %v417_v13 = vadd.f32 %v608_v10, %v282_v9  ;;  %v537_v14 = vadd.f32 %v536_v11, %v535_v7 }
 0x12c   :  { %v538_v15 = vpop.f32.mrf.mxu0  ;;  %v611_v18 = vadd.f32 %v610_v12, %v609_v8 }
 0x12d   :  { %v612_v16 = vpop.f32.mrf.mxu1  ;;  %449 = vst [vmem:[#allocation7 + $0x48] sm:$0xff] %v417_v13  ;;  %v287_v17 = vadd.f32 %v537_v14, %v733_v58 }
 0x12e   :  { %v539_v19 = vpop.f32.mrf.mxu0 }
 0x12f   :  { %v613_v20 = vpop.f32.mrf.mxu1  ;;  %v422_v21 = vadd.f32 %v611_v18, %v287_v17  ;;  %v540_v22 = vadd.f32 %v539_v19, %v538_v15 }
 0x130   :  { %v541_v23 = vpop.f32.mrf.mxu0  ;;  %v614_v26 = vadd.f32 %v613_v20, %v612_v16 }
 0x131   :  { %v615_v24 = vpop.f32.mrf.mxu1  ;;  %450 = vst [vmem:[#allocation7 + $0x50] sm:$0xff] %v422_v21  ;;  %v292_v25 = vadd.f32 %v540_v22, %v733_v58 }
 0x132   :  { %v542_v27 = vpop.f32.mrf.mxu0 }
 0x133   :  { %v616_v28 = vpop.f32.mrf.mxu1  ;;  %v427_v29 = vadd.f32 %v614_v26, %v292_v25  ;;  %v543_v30 = vadd.f32 %v542_v27, %v541_v23 }
 0x134   :  { %v544_v31 = vpop.f32.mrf.mxu0  ;;  %v617_v34 = vadd.f32 %v616_v28, %v615_v24 }
 0x135   :  { %v618_v32 = vpop.f32.mrf.mxu1  ;;  %451 = vst [vmem:[#allocation7 + $0x58] sm:$0xff] %v427_v29  ;;  %v297_v33 = vadd.f32 %v543_v30, %v733_v58 }
 0x136   :  { %v545_v35 = vpop.f32.mrf.mxu0 }
 0x137   :  { %v619_v36 = vpop.f32.mrf.mxu1  ;;  %v432_v37 = vadd.f32 %v617_v34, %v297_v33  ;;  %v546_v38 = vadd.f32 %v545_v35, %v544_v31 }
 0x138   :  { %v620_v40 = vadd.f32 %v619_v36, %v618_v32 }
 0x139   :  { %452 = vst [vmem:[#allocation7 + $0x60] sm:$0xff] %v432_v37  ;;  %v302_v39 = vadd.f32 %v546_v38, %v733_v58 }
 0x13b   :  { %v437_v41 = vadd.f32 %v620_v40, %v302_v39 }
 0x13d   :  { %453 = vst [vmem:[#allocation7 + $0x68] sm:$0xff] %v437_v41 }
 0x13e   :  { %679 = shalt.err (!%p676_p0)
}
 0x13f   :  { %465 = dma.vmem_to_hbm [thread:$0]  %s460_s26, 1792, %s758_s3, [#allocation4], %s698_s22, %s698_s22, %s699_s23  }
 0x140   :  { %692 = dma.done.wait [#allocation4], 1792  }
 0x141   :  { %693 = vsyncadd [#allocation4], 4294965504 }
 0x142   :  { %469 = vsyncpa [#allocation3], 1 }
 0x143   :  { %470 = vsyncpa [#allocation6], 1 }
 0x144   :  { %471 = vsyncpa [#allocation4], 1 }

</bundles_post_ra>
